<compile_context>
chip_gen: v7x
topology: tpu7x:2x2x1
jax: 0.10.0
libtpu: 0.0.40
codegen_flags: <defaults>
</compile_context>

<pallas_src>
import functools

import jax
import jax.numpy as jnp
from jax.experimental import pallas as pl
from jax.experimental.pallas import tpu as pltpu

_LANE = 128     # vreg lane width  (last dim)
_SUBLANE = 8    # vreg sublane depth (second-to-last dim)

# Single-TC generations (v5e/v6e) gain nothing from a batch grid (serial loop,
# ~0.35us/step), so stay all-resident until the batch is genuinely large; the
# grid path uses a big tile so per-step overhead amortizes and v7x's two
# TensorCores both get work via dimension_semantics=("parallel",).
_GRID_BATCH_THRESHOLD = 2048
_BATCH_TILE = 512


def _round_up(x, m):
    return ((x + m - 1) // m) * m


# --------------------------------------------------------------------------
# Fused kernel: layer 0, fori_loop over stacked hidden layers, output layer.
# Activations stay in vregs/VMEM for the whole network.
# --------------------------------------------------------------------------
def _mlp_kernel(x_ref, *refs, activation, hidden_dim, n_hidden):
    o_ref = refs[-1]
    if n_hidden > 0:
        w0_ref, b0_ref, ws_ref, bs_ref, wl_ref, bl_ref = refs[:-1]
    else:
        w0_ref, b0_ref, wl_ref, bl_ref = refs[:-1]
        ws_ref = bs_ref = None

    x = x_ref[...]
    rows = x.shape[0]
    h_pad = w0_ref.shape[-1]

    # Hoisted softmax lane mask: built once, reused by every hidden layer
    # (JAX does not CSE broadcast_in_dim, so keep it out of the loop).
    if activation == "softmax" and hidden_dim < h_pad:
        lane = jax.lax.broadcasted_iota(jnp.int32, (rows, h_pad), 1)
        pad_mask = lane < hidden_dim
    else:
        pad_mask = None

    def act(y):
        if activation == "softmax":
            if pad_mask is not None:
                y = jnp.where(pad_mask, y, -jnp.inf)      # padded lanes -> exp()=0
            m = jnp.max(y, axis=-1, keepdims=True)
            e = jnp.exp(y - m)
            denom = jnp.sum(e, axis=-1, keepdims=True)
            return e * pl.reciprocal(denom, approx=False)  # exact, keeps 1e-5 tol
        # F.leaky_relu default negative_slope=0.01 (mul+max: 2 VALU ops)
        return jnp.maximum(y, 0.01 * y)

    # Layer 0 (input_dim -> hidden); MXU accumulates in f32.
    y0 = jnp.dot(x.astype(w0_ref.dtype), w0_ref[...],
                 preferred_element_type=jnp.float32)
    s = act(y0 + b0_ref[...].astype(jnp.float32))

    # Stacked identical hidden layers (hidden -> hidden), dynamic ref indexing.
    if n_hidden > 0:
        def body(l, s):
            w = ws_ref[l]                                  # (h_pad, h_pad)
            b = bs_ref[l]                                  # (1, h_pad)
            y = jnp.dot(s.astype(w.dtype), w,
                        preferred_element_type=jnp.float32)
            return act(y + b.astype(jnp.float32))
        s = jax.lax.fori_loop(0, n_hidden, body, s)

    # Output layer (hidden -> output_dim), no activation.
    y = jnp.dot(s.astype(wl_ref.dtype), wl_ref[...],
                preferred_element_type=jnp.float32)
    o_ref[...] = (y + bl_ref[...].astype(jnp.float32)).astype(o_ref.dtype)


# --------------------------------------------------------------------------
# pallas_call wrapper (single block, or batch-tiled grid for big batches)
# --------------------------------------------------------------------------
def mlp_pallas(x_p, flat_params, *, activation, hidden_dim, n_hidden,
               batch_tile=None):
    Bp, Din_p = x_p.shape
    Dout_p = flat_params[-2].shape[-1]
    h_pad = flat_params[0].shape[-1]
    kernel = functools.partial(
        _mlp_kernel, activation=activation,
        hidden_dim=hidden_dim, n_hidden=n_hidden,
    )

    use_grid = batch_tile is not None and batch_tile < Bp

    # Explicit, generation-aware VMEM budget:
    #   weights are single-buffered (whole-array VMEM specs, never pipelined);
    #   x/out tiles are double-buffered only in the grid path.
    param_bytes = sum(int(p.size) * p.dtype.itemsize for p in flat_params)
    tile_rows = batch_tile if use_grid else Bp
    nbuf = 2 if use_grid else 1
    io_bytes = nbuf * tile_rows * (Din_p * x_p.dtype.itemsize + Dout_p * 4)
    live_act_bytes = 3 * tile_rows * h_pad * 4             # a few live f32 activations
    budget = param_bytes + io_bytes + live_act_bytes + (4 << 20)
    try:
        phys_vmem = int(pltpu.get_tpu_info().vmem_capacity_bytes)
    except Exception:
        phys_vmem = 64 << 20                                # v7x per-TC; safe lower bound
    vmem_limit = min(max(budget, 32 << 20), max(phys_vmem - (2 << 20), 16 << 20))

    if not use_grid:
        # Everything (x, all weights/biases, output) resident in VMEM, no grid.
        return pl.pallas_call(
            kernel,
            out_shape=jax.ShapeDtypeStruct((Bp, Dout_p), jnp.float32),
            in_specs=[pl.BlockSpec(memory_space=pltpu.MemorySpace.VMEM)]
            * (1 + len(flat_params)),
            out_specs=pl.BlockSpec(memory_space=pltpu.MemorySpace.VMEM),
            compiler_params=pltpu.CompilerParams(vmem_limit_bytes=vmem_limit),
        )(x_p, *flat_params)

    # Batch-tiled grid: only x / out are pipelined; weights are whole-array
    # VMEM residents (no double-buffering, no per-step DMA bookkeeping).
    assert Bp % batch_tile == 0
    in_specs = [pl.BlockSpec((batch_tile, Din_p), lambda i: (i, 0))]
    in_specs += [pl.BlockSpec(memory_space=pltpu.MemorySpace.VMEM)
                 for _ in flat_params]
    return pl.pallas_call(
        kernel,
        out_shape=jax.ShapeDtypeStruct((Bp, Dout_p), jnp.float32),
        grid=(Bp // batch_tile,),
        in_specs=in_specs,
        out_specs=pl.BlockSpec((batch_tile, Dout_p), lambda i: (i, 0)),
        compiler_params=pltpu.CompilerParams(
            dimension_semantics=("parallel",), vmem_limit_bytes=vmem_limit),
    )(x_p, *flat_params)


# --------------------------------------------------------------------------
# Jitted forward: minimal padding (batch -> 8, features already padded in the
# stored parameters), fused kernel, slice back to logical shape.
# --------------------------------------------------------------------------
def _forward_impl(x, flat_params, activation, hidden_dim, n_hidden, out_dim):
    B, Din = x.shape
    Din_p = flat_params[0].shape[0]          # round_up(Din, 8) — NOT 128
    if B > _GRID_BATCH_THRESHOLD:
        batch_tile = _BATCH_TILE
        Bp = _round_up(B, batch_tile)
    else:
        batch_tile = None
        Bp = _round_up(B, _SUBLANE)
    if (Bp, Din_p) == (B, Din) and x.dtype == jnp.float32:
        x_p = x                               # no host-side copy when already aligned
    else:
        x_p = jnp.zeros((Bp, Din_p), jnp.float32).at[:B, :Din].set(
            x.astype(jnp.float32))
    out_p = mlp_pallas(
        x_p, flat_params,
        activation=activation, hidden_dim=hidden_dim, n_hidden=n_hidden,
        batch_tile=batch_tile,
    )
    return out_p[:B, :out_dim]


_forward = jax.jit(
    _forward_impl,
    static_argnames=("activation", "hidden_dim", "n_hidden", "out_dim"),
)


class NeuralNetworkPallas:
    """Mirrors the PyTorch NeuralNetwork module (forward pass only)."""

    def __init__(self, input_dim, output_dim, hidden_size, hidden_layers,
                 activation, key, param_dtype=jnp.float32):
        # param_dtype=jnp.bfloat16 recommended at large hidden_size on v6e/v7x
        # (MXU-native, halves resident VMEM); accumulation stays f32 in-kernel.
        self.activation = activation
        self.input_dim = input_dim
        self.output_dim = output_dim
        self.hidden_size = hidden_size
        self.hidden_layers = hidden_layers

        din_p = _round_up(input_dim, _SUBLANE)     # sublane-aligned K only
        h_p = _round_up(hidden_size, _LANE)        # lane-dense hidden width
        out_p = _round_up(output_dim, _LANE)       # lane-dense output (unmasked stores)

        def init_linear(key, fan_in, fan_out):
            # nn.Linear default init: U(-1/sqrt(fan_in), 1/sqrt(fan_in)) for w and b.
            kw, kb = jax.random.split(key)
            bound = 1.0 / (fan_in ** 0.5)
            w = jax.random.uniform(kw, (fan_in, fan_out), jnp.float32, -bound, bound)
            b = jax.random.uniform(kb, (1, fan_out), jnp.float32, -bound, bound)
            return w, b

        self.params = []                            # unpadded (reference checks)

        # Layer 0: input_dim -> hidden
        key, k0 = jax.random.split(key)
        w0, b0 = init_linear(k0, input_dim, hidden_size)
        self.params.append((w0, b0))
        w0_p = jnp.zeros((din_p, h_p), param_dtype).at[:input_dim, :hidden_size].set(
            w0.astype(param_dtype))
        b0_p = jnp.zeros((1, h_p), param_dtype).at[:, :hidden_size].set(
            b0.astype(param_dtype))

        # Hidden layers: stacked (L, H, H) / (L, 1, H)
        ws, bs = [], []
        for _ in range(hidden_layers):
            key, kl = jax.random.split(key)
            w, b = init_linear(kl, hidden_size, hidden_size)
            self.params.append((w, b))
            wp = jnp.zeros((h_p, h_p), param_dtype).at[:hidden_size, :hidden_size].set(
                w.astype(param_dtype))
            bp = jnp.zeros((1, h_p), param_dtype).at[:, :hidden_size].set(
                b.astype(param_dtype))
            ws.append(wp)
            bs.append(bp)

        # Output layer: hidden -> output_dim
        key, ko = jax.random.split(key)
        wl, bl = init_linear(ko, hidden_size, output_dim)
        self.params.append((wl, bl))
        wl_p = jnp.zeros((h_p, out_p), param_dtype).at[:hidden_size, :output_dim].set(
            wl.astype(param_dtype))
        bl_p = jnp.zeros((1, out_p), param_dtype).at[:, :output_dim].set(
            bl.astype(param_dtype))

        if hidden_layers > 0:
            self.flat_params = (w0_p, b0_p,
                                jnp.stack(ws, axis=0), jnp.stack(bs, axis=0),
                                wl_p, bl_p)
        else:
            self.flat_params = (w0_p, b0_p, wl_p, bl_p)

    def __call__(self, s):
        return _forward(s, self.flat_params,
                        activation=self.activation,
                        hidden_dim=self.hidden_size,
                        n_hidden=self.hidden_layers,
                        out_dim=self.output_dim)


# --------------------------------------------------------------------------
# Pure-JAX reference (same semantics as the PyTorch forward)
# --------------------------------------------------------------------------
def _reference(x, params, activation):
    s = x
    for (w, b) in params[:-1]:
        y = s @ w + b
        if activation == "softmax":
            s = jax.nn.softmax(y, axis=-1)
        else:
            s = jnp.where(y > 0, y, 0.01 * y)
    w, b = params[-1]
    return s @ w + b


if __name__ == "__main__":
    key = jax.random.PRNGKey(0)
    k_params, k_params2, k_x, k_x2 = jax.random.split(key, 4)

    input_dim, output_dim, hidden_size, hidden_layers = 16, 8, 32, 2
    batch = 4

    # --- leaky_relu network, small batch (single fused VMEM-resident kernel)
    net = NeuralNetworkPallas(input_dim, output_dim, hidden_size, hidden_layers,
                              "leaky_relu", k_params)
    x = jax.random.normal(k_x, (batch, input_dim), dtype=jnp.float32)
    out = net(x)
    jax.block_until_ready(out)
    ref = _reference(x, net.params, "leaky_relu")
    assert out.shape == (batch, output_dim)
    assert jnp.allclose(out, ref, atol=1e-5, rtol=1e-5)

    # --- softmax network (exercises the hoisted masked softmax over padded lanes)
    net_sm = NeuralNetworkPallas(input_dim, output_dim, hidden_size, hidden_layers,
                                 "softmax", k_params2)
    out_sm = net_sm(x)
    jax.block_until_ready(out_sm)
    ref_sm = _reference(x, net_sm.params, "softmax")
    assert jnp.allclose(out_sm, ref_sm, atol=1e-5, rtol=1e-5)

    # --- large batch exercises the batch-tiled grid path (512-row tiles,
    #     weights whole-array VMEM-resident, "parallel" grid semantics)
    big_batch = 4096
    xb = jax.random.normal(k_x2, (big_batch, input_dim), dtype=jnp.float32)
    out_b = net(xb)
    jax.block_until_ready(out_b)
    ref_b = _reference(xb, net.params, "leaky_relu")
    assert out_b.shape == (big_batch, output_dim)
    assert jnp.allclose(out_b, ref_b, atol=1e-5, rtol=1e-5)

    print("KERNEL_OK")
</pallas_src>

<mosaic_0001>
module attributes {stable_mosaic.version = 11 : i64} {
  func.func @_mlp_kernel(%arg0: memref<8x16xf32, #tpu.memory_space<vmem>>, %arg1: memref<16x128xf32, #tpu.memory_space<vmem>>, %arg2: memref<1x128xf32, #tpu.memory_space<vmem>>, %arg3: memref<2x128x128xf32, #tpu.memory_space<vmem>>, %arg4: memref<2x1x128xf32, #tpu.memory_space<vmem>>, %arg5: memref<128x128xf32, #tpu.memory_space<vmem>>, %arg6: memref<1x128xf32, #tpu.memory_space<vmem>>, %arg7: memref<8x128xf32, #tpu.memory_space<vmem>>) attributes {dimension_semantics = [], scalar_prefetch = 0 : i64, scratch_operands = 0 : i64, tpu.core_type = #tpu.core_type<tc>} {
    %c0 = arith.constant 0 : index
    %c0_0 = arith.constant 0 : index
    %0 = vector.load %arg0[%c0, %c0_0] : memref<8x16xf32, #tpu.memory_space<vmem>>, vector<8x16xf32>
    %c0_1 = arith.constant 0 : index
    %c0_2 = arith.constant 0 : index
    %1 = vector.load %arg1[%c0_1, %c0_2] : memref<16x128xf32, #tpu.memory_space<vmem>>, vector<16x128xf32>
    %cst = arith.constant dense<0.000000e+00> : vector<8x128xf32>
    %2 = tpu.matmul %0, %1, %cst {dimension_numbers = #tpu.dot_dimension_numbers<[1], [0], [0], [1], [0, 0, 1, 1], [], []>} : vector<8x16xf32>, vector<16x128xf32>, vector<8x128xf32> -> vector<8x128xf32>
    %c0_3 = arith.constant 0 : index
    %c0_4 = arith.constant 0 : index
    %3 = vector.load %arg2[%c0_3, %c0_4] : memref<1x128xf32, #tpu.memory_space<vmem>>, vector<1x128xf32>
    %4 = vector.broadcast %3 : vector<1x128xf32> to vector<8x128xf32>
    %5 = arith.addf %2, %4 : vector<8x128xf32>
    %cst_5 = arith.constant 0.00999999977 : f32
    %6 = vector.broadcast %cst_5 : f32 to vector<8x128xf32>
    %7 = arith.mulf %6, %5 : vector<8x128xf32>
    %8 = arith.maximumf %5, %7 : vector<8x128xf32>
    %c0_i32 = arith.constant 0 : i32
    %c2_i32 = arith.constant 2 : i32
    %9 = arith.addi %c0_i32, %c2_i32 : i32
    %c1_i32 = arith.constant 1 : i32
    %10 = scf.for %arg8 = %c0_i32 to %9 step %c1_i32 iter_args(%arg9 = %8) -> (vector<8x128xf32>)  : i32 {
      %17 = arith.index_cast %arg8 : i32 to index
      %c0_14 = arith.constant 0 : index
      %c0_15 = arith.constant 0 : index
      %18 = vector.load %arg3[%17, %c0_14, %c0_15] : memref<2x128x128xf32, #tpu.memory_space<vmem>>, vector<1x128x128xf32>
      %19 = vector.shape_cast %18 : vector<1x128x128xf32> to vector<128x128xf32>
      %20 = arith.index_cast %arg8 : i32 to index
      %c0_16 = arith.constant 0 : index
      %c0_17 = arith.constant 0 : index
      %21 = vector.load %arg4[%20, %c0_16, %c0_17] : memref<2x1x128xf32, #tpu.memory_space<vmem>>, vector<1x1x128xf32>
      %22 = vector.shape_cast %21 : vector<1x1x128xf32> to vector<1x128xf32>
      %cst_18 = arith.constant dense<0.000000e+00> : vector<8x128xf32>
      %23 = tpu.matmul %arg9, %19, %cst_18 {dimension_numbers = #tpu.dot_dimension_numbers<[1], [0], [0], [1], [0, 0, 1, 1], [], []>} : vector<8x128xf32>, vector<128x128xf32>, vector<8x128xf32> -> vector<8x128xf32>
      %24 = vector.broadcast %22 : vector<1x128xf32> to vector<8x128xf32>
      %25 = arith.addf %23, %24 : vector<8x128xf32>
      %cst_19 = arith.constant 0.00999999977 : f32
      %26 = vector.broadcast %cst_19 : f32 to vector<8x128xf32>
      %27 = arith.mulf %26, %25 : vector<8x128xf32>
      %28 = arith.maximumf %25, %27 : vector<8x128xf32>
      scf.yield %28 : vector<8x128xf32>
    }
    %c2_i32_6 = arith.constant 2 : i32
    %c0_7 = arith.constant 0 : index
    %c0_8 = arith.constant 0 : index
    %11 = vector.load %arg5[%c0_7, %c0_8] : memref<128x128xf32, #tpu.memory_space<vmem>>, vector<128x128xf32>
    %cst_9 = arith.constant dense<0.000000e+00> : vector<8x128xf32>
    %12 = tpu.matmul %10, %11, %cst_9 {dimension_numbers = #tpu.dot_dimension_numbers<[1], [0], [0], [1], [0, 0, 1, 1], [], []>} : vector<8x128xf32>, vector<128x128xf32>, vector<8x128xf32> -> vector<8x128xf32>
    %c0_10 = arith.constant 0 : index
    %c0_11 = arith.constant 0 : index
    %13 = vector.load %arg6[%c0_10, %c0_11] : memref<1x128xf32, #tpu.memory_space<vmem>>, vector<1x128xf32>
    %14 = vector.broadcast %13 : vector<1x128xf32> to vector<8x128xf32>
    %15 = arith.addf %12, %14 : vector<8x128xf32>
    %c0_12 = arith.constant 0 : index
    %c0_13 = arith.constant 0 : index
    %16 = vector.load %arg7[%c0_12, %c0_13] : memref<8x128xf32, #tpu.memory_space<vmem>>, vector<8x128xf32>
    tpu.vector_store %arg7[%c0_12, %c0_13], %15 {strides = array<i32>} : memref<8x128xf32, #tpu.memory_space<vmem>>, vector<8x128xf32>,
    return
  }
}

</mosaic_0001>

<bundles_post_ra>
// kernel: _forward_impl.1
= control target key start
LH: loop header
LB: loop body
LE: loop exit
PB: predicated region body
PF: predicated region fallthrough
CT: control target
= control target key end

     0   :  { %12 = vsyncpa [#allocation3], 0  ;;  %s757_s0 = inlined_call_operand.vmem [shape: f32[8,16], index: 0, kind: input, shape index: {}]   ;;  %s758_s1 = inlined_call_operand.vmem [shape: f32[16,128], index: 1, kind: input, shape index: {}]   ;;  %s759_s2 = inlined_call_operand.vmem [shape: f32[1,128], index: 2, kind: input, shape index: {}]   ;;  %s760_s3 = inlined_call_operand.hbm [shape: f32[2,128,128], index: 3, kind: input, shape index: {}]   ;;  %s761_s4 = inlined_call_operand.vmem [shape: f32[2,1,128], index: 4, kind: input, shape index: {}]   ;;  %s762_s5 = inlined_call_operand.hbm [shape: f32[128,128], index: 5, kind: input, shape index: {}]   ;;  %s763_s6 = inlined_call_operand.vmem [shape: f32[1,128], index: 6, kind: input, shape index: {}]   ;;  %s764_s7 = inlined_call_operand.vmem [shape: f32[8,128], index: 7, kind: output, shape index: {}]  }
   0x1   :  { %13 = vsyncpa [#allocation5], 0  ;;  %s616_s24 = smov [#allocation2]   ;;  %s552_s28 = scalar_lea.hbm %s760_s3, 4096 }
   0x2   :  { %s25_s25 = sshll.u32 %s616_s24, 4  ;;  %p553_p0 = scmp.ne.s32.totalorder %s760_s3, %s552_s28  ;;  %s26_s25 = int_to_ptr.vmem [resolvable:$true] %s25_s25 }
   0x3   :  { %p556_p1 = scmp.lt.u32.totalorder %s552_s28, %s760_s3 }
   0x5   :  { %p558_p2 = pnand %p556_p1, %p553_p0 }
   0x7   :  { %561 = shalt.err (!%p558_p2)
}
   0x8   :  { %s562_s10 = scalar_lea.vmem %s26_s25, 4096  ;;  %p567_p4 = scmp.lt.s32.totalorder %s26_s25, %s26_s25 }
   0x9   :  { %p563_p3 = scmp.ne.s32.totalorder %s26_s25, %s562_s10  ;;  %p568_p5 = scmp.lt.s32.totalorder %s562_s10, %s562_s10 }
   0xb   :  { %p569_p6 = por %p568_p5, %p567_p4 }
   0xd   :  { %p570_p7 = pnand %p569_p6, %p563_p3 }
   0xf   :  { %573 = shalt.err (!%p570_p7)
}
  0x10   :  { %s617_s11 = smov 128   ;;  %s618_s12 = smov 8  }
  0x11   :  { %31 = dma.hbm_to_vmem [thread:$0]  %s760_s3, 4096, %s26_s25, [#allocation3], %s617_s11, %s617_s11, %s618_s12  }
  0x12   :  { %s619_s15 = smov [#allocation4]   ;;  %s574_s19 = scalar_lea.hbm %s762_s5, 2048 }
  0x13   :  { %s39_s16 = sshll.u32 %s619_s15, 4  ;;  %p575_p8 = scmp.ne.s32.totalorder %s762_s5, %s574_s19  ;;  %s40_s16 = int_to_ptr.vmem [resolvable:$true] %s39_s16 }
  0x14   :  { %p578_p9 = scmp.lt.u32.totalorder %s574_s19, %s762_s5 }
  0x16   :  { %p580_p10 = pnand %p578_p9, %p575_p8 }
  0x18   :  { %583 = shalt.err (!%p580_p10)
}
  0x19   :  { %s584_s24 = scalar_lea.vmem %s40_s16, 2048  ;;  %p589_p12 = scmp.lt.s32.totalorder %s40_s16, %s40_s16 }
  0x1a   :  { %p585_p11 = scmp.ne.s32.totalorder %s40_s16, %s584_s24  ;;  %p590_p13 = scmp.lt.s32.totalorder %s584_s24, %s584_s24 }
  0x1c   :  { %p591_p0 = por %p590_p13, %p589_p12 }
  0x1e   :  { %p592_p1 = pnand %p591_p0, %p585_p11 }
  0x20   :  { %595 = shalt.err (!%p592_p1)
}
  0x21   :  { %45 = dma.hbm_to_vmem [thread:$0]  %s762_s5, 2048, %s40_s16, [#allocation5], %s617_s11, %s617_s11, %s618_s12  }
  0x22   :  { %604 = dma.done.wait [#allocation3], 4096  }
  0x23   :  { %605 = vsyncadd [#allocation3], 4294963200 }
  0x24   :  { %606 = dma.done.wait [#allocation5], 2048  }
  0x25   :  { %607 = vsyncadd [#allocation5], 4294965248  ;;  %v620_v0 = vmov 0.0|0.0   ;;  %vm621_vm0 = vmmov 0   ;;  %v622_v1 = vmov 0.0   ;;  %v55_v2 = vld [vmem:[%s758_s1] sm:$0xff] }
  0x26   :  { %475 = vmatprep.subr.bf16.mxu0 %v620_v0  ;;  %402 = vmatprep.mubr.msk.f32.mxu0 %vm621_vm0, %v622_v1  ;;  %v56_v3 = vld [vmem:[%s758_s1 + $0x8] sm:$0xff]  ;;  %v54_v5 = vld [vmem:[%s757_s0] sm:$0xff]  ;;  %vm64_vm1 = vcmask 130048   ;;  %s707_s1 = smov 0  }
  0x27   :  { %v476_v4 = vpack.c.bf16 %v56_v3, %v55_v2  ;;  %v356_v6 = vld [vmem:[%s759_s2] ss:$0 sm:$0xff] }
  0x29   :  { %477 = vmatpush3.bf16.msra.mxu0 %v476_v4 }
  0x2c   :  { %403 = vmatmul.mubr.msk.f32.vlgmr.msra.gmra.mrb[0].mxu0 %vm64_vm1, %v54_v5 }
  0xff   :  { %v134_v7 = vpop.f32.mrb[0].mxu0 }
 0x100   :  { %v135_v8 = vadd.f32 %v356_v6, %v134_v7  ;;  %v404_v9 = vpop.f32.mrb[1].mxu0 }
 0x102   :  { %v138_v10 = vmul.f32 0.01, %v135_v8 }
 0x104   :  { %v139_v11 = vmax.f32 %v135_v8, %v138_v10  }
 0x105 LB: > { %v623_v12 = vmov 0.0|0.0   ;;  %vm624_vm2 = vmmov 0   ;;  %v625_v13 = vmov 0.0   ;;  %s358_s0 = sshll.u32 %s614_s1, 7  ;;  %s165_s12 = scalar_lea.vmem %s761_s4, %s614_s1  ;;  %s614_s1 = sphi %s707_s1, %s145_s1   ;;  %v610_v11 = vphi %v139_v11, %v765_v11  }
 0x106   : > { %478 = vmatprep.subr.bf16.mxu0 %v623_v12  ;;  %437 = vmatprep.mubr.msk.f32.mxu0 %vm624_vm2, %v625_v13  ;;  %s714_s2 = scalar_lea.vmem [#allocation2], %s358_s0  ;;  %v359_v38 = vld [vmem:[%s165_s12] ss:$0 sm:$0xff]  ;;  %s145_s1 = sadd.s32 1, %s614_s1  }
 0x107   : > { %v149_v14 = vld [vmem:[%s714_s2] sm:$0xff]  ;;  %v150_v15 = vld [vmem:[%s714_s2 + $0x8] sm:$0xff]  ;;  %v151_v16 = vld [vmem:[%s714_s2 + $0x10] sm:$0xff]  ;;  %p142_p2 = scmp.ge.s32.totalorder %s145_s1, 2  }
 0x108   : > { %v479_v17 = vpack.c.bf16 %v150_v15, %v149_v14  ;;  %v152_v18 = vld [vmem:[%s714_s2 + $0x18] sm:$0xff]  ;;  %v153_v20 = vld [vmem:[%s714_s2 + $0x20] sm:$0xff]  ;;  %v154_v21 = vld [vmem:[%s714_s2 + $0x28] sm:$0xff] }
 0x109   : > { %v482_v19 = vpack.c.bf16 %v152_v18, %v151_v16  ;;  %v485_v22 = vpack.c.bf16 %v154_v21, %v153_v20  ;;  %v155_v23 = vld [vmem:[%s714_s2 + $0x30] sm:$0xff]  ;;  %v156_v24 = vld [vmem:[%s714_s2 + $0x38] sm:$0xff]  ;;  %v157_v26 = vld [vmem:[%s714_s2 + $0x40] sm:$0xff] }
 0x10a   : > { %480 = vmatpush3.bf16.msra.mxu0 %v479_v17  ;;  %v488_v25 = vpack.c.bf16 %v156_v24, %v155_v23  ;;  %v158_v27 = vld [vmem:[%s714_s2 + $0x48] sm:$0xff]  ;;  %v159_v29 = vld [vmem:[%s714_s2 + $0x50] sm:$0xff]  ;;  %v160_v30 = vld [vmem:[%s714_s2 + $0x58] sm:$0xff] }
 0x10b   : > { %481 = vmatprep.subr.bf16.mxu0 %v623_v12  ;;  %v491_v28 = vpack.c.bf16 %v158_v27, %v157_v26  ;;  %v494_v31 = vpack.c.bf16 %v160_v30, %v159_v29  ;;  %v161_v32 = vld [vmem:[%s714_s2 + $0x60] sm:$0xff]  ;;  %v162_v33 = vld [vmem:[%s714_s2 + $0x68] sm:$0xff]  ;;  %v163_v35 = vld [vmem:[%s714_s2 + $0x70] sm:$0xff] }
 0x10c   : > { %v497_v34 = vpack.c.bf16 %v162_v33, %v161_v32  ;;  %v164_v36 = vld [vmem:[%s714_s2 + $0x78] sm:$0xff]  ;;  %v245_v44 = vld [vmem:[#allocation4] sm:$0xff] (%p142_p2)  ;;  %v246_v45 = vld [vmem:[#allocation4 + $0x8] sm:$0xff] (%p142_p2) }
 0x10d   : > { %v500_v37 = vpack.c.bf16 %v164_v36, %v163_v35  ;;  %v247_v46 = vld [vmem:[#allocation4 + $0x10] sm:$0xff] (%p142_p2)  ;;  %v503_v47 = vpack.c.bf16 (%p142_p2), %v246_v45, %v245_v44  ;;  %v248_v48 = vld [vmem:[#allocation4 + $0x18] sm:$0xff] (%p142_p2)  ;;  %v249_v50 = vld [vmem:[#allocation4 + $0x20] sm:$0xff] (%p142_p2) }
 0x10e   : > { %483 = vmatpush3.bf16.msra.mxu0 %v482_v19  ;;  %v506_v49 = vpack.c.bf16 (%p142_p2), %v248_v48, %v247_v46  ;;  %v250_v51 = vld [vmem:[#allocation4 + $0x28] sm:$0xff] (%p142_p2)  ;;  %v251_v53 = vld [vmem:[#allocation4 + $0x30] sm:$0xff] (%p142_p2)  ;;  %v252_v54 = vld [vmem:[#allocation4 + $0x38] sm:$0xff] (%p142_p2) }
 0x10f   : > { %484 = vmatprep.subr.bf16.mxu0 %v623_v12  ;;  %v509_v52 = vpack.c.bf16 (%p142_p2), %v250_v51, %v249_v50  ;;  %v512_v55 = vpack.c.bf16 (%p142_p2), %v252_v54, %v251_v53  ;;  %v253_v56 = vld [vmem:[#allocation4 + $0x40] sm:$0xff] (%p142_p2)  ;;  %v254_v57 = vld [vmem:[#allocation4 + $0x48] sm:$0xff] (%p142_p2)  ;;  %v255_v59 = vld [vmem:[#allocation4 + $0x50] sm:$0xff] (%p142_p2) }
 0x110   :  { %v515_v58 = vpack.c.bf16 (%p142_p2), %v254_v57, %v253_v56  ;;  %v256_v60 = vld [vmem:[#allocation4 + $0x58] sm:$0xff] (%p142_p2)  ;;  %v257_v62 = vld [vmem:[#allocation4 + $0x60] sm:$0xff] (%p142_p2)  ;;  %v258_v63 = vld [vmem:[#allocation4 + $0x68] sm:$0xff] (%p142_p2) }
 0x111   :  { %v518_v61 = vpack.c.bf16 (%p142_p2), %v256_v60, %v255_v59  ;;  %v259_v2 = vld [vmem:[#allocation4 + $0x70] sm:$0xff] (%p142_p2)  ;;  %v260_v3 = vld [vmem:[#allocation4 + $0x78] sm:$0xff] (%p142_p2)  ;;  %v360_v5 = vld [vmem:[%s763_s6] ss:$0 sm:$0xff] (%p142_p2) }
 0x112   : > { %486 = vmatpush3.bf16.msra.mxu0 %v485_v22  ;;  %v524_v4 = vpack.c.bf16 (%p142_p2), %v260_v3, %v259_v2 }
 0x113   : > { %487 = vmatprep.subr.bf16.mxu0 %v623_v12 }
 0x116   : > { %489 = vmatpush3.bf16.msra.mxu0 %v488_v25 }
 0x117   : > { %490 = vmatprep.subr.bf16.mxu0 %v623_v12 }
 0x11a   : > { %492 = vmatpush3.bf16.msra.mxu0 %v491_v28 }
 0x11b   : > { %493 = vmatprep.subr.bf16.mxu0 %v623_v12 }
 0x11e   : > { %495 = vmatpush3.bf16.msra.mxu0 %v494_v31 }
 0x11f   : > { %496 = vmatprep.subr.bf16.mxu0 %v623_v12 }
 0x122   : > { %498 = vmatpush3.bf16.msra.mxu0 %v497_v34 }
 0x123   : > { %499 = vmatprep.subr.bf16.mxu0 %v623_v12 }
 0x126   : > { %501 = vmatpush3.bf16.msra.mxu0 %v500_v37 }
 0x127   :  { %502 = vmatprep.subr.bf16.mxu0 (%p142_p2), %v620_v0 }
 0x129   : > { %438 = vmatmul.mubr.f32.vlgmr.msra.gmra.mrb[0].mxu0 %v610_v11 }
 0x12a   :  { %472 = vmatprep.mubr.msk.f32.mxu0 (%p142_p2), %vm621_vm0, %v622_v1  ;;  %504 = vmatpush3.bf16.msra.mxu0 (%p142_p2), %v503_v47  ;;  %v521_v1 = vpack.c.bf16 (%p142_p2), %v258_v63, %v257_v62 }
 0x12b   :  { %505 = vmatprep.subr.bf16.mxu0 (%p142_p2), %v620_v0 }
 0x12e   :  { %507 = vmatpush3.bf16.msra.mxu0 (%p142_p2), %v506_v49 }
 0x12f   :  { %508 = vmatprep.subr.bf16.mxu0 (%p142_p2), %v620_v0 }
 0x132   :  { %510 = vmatpush3.bf16.msra.mxu0 (%p142_p2), %v509_v52 }
 0x133   :  { %511 = vmatprep.subr.bf16.mxu0 (%p142_p2), %v620_v0 }
 0x136   :  { %513 = vmatpush3.bf16.msra.mxu0 (%p142_p2), %v512_v55 }
 0x137   :  { %514 = vmatprep.subr.bf16.mxu0 (%p142_p2), %v620_v0 }
 0x13a   :  { %516 = vmatpush3.bf16.msra.mxu0 (%p142_p2), %v515_v58 }
 0x13b   :  { %517 = vmatprep.subr.bf16.mxu0 (%p142_p2), %v620_v0 }
 0x13e   :  { %519 = vmatpush3.bf16.msra.mxu0 (%p142_p2), %v518_v61 }
 0x13f   :  { %520 = vmatprep.subr.bf16.mxu0 (%p142_p2), %v620_v0 }
 0x142   :  { %522 = vmatpush3.bf16.msra.mxu0 (%p142_p2), %v521_v1 }
 0x143   :  { %523 = vmatprep.subr.bf16.mxu0 (%p142_p2), %v620_v0 }
 0x146   :  { %525 = vmatpush3.bf16.msra.mxu0 (%p142_p2), %v524_v4 }
 0x1fc   : > { %v239_v39 = vpop.f32.mrb[0].mxu0 }
 0x1fd   : > { %v240_v40 = vadd.f32 %v359_v38, %v239_v39  ;;  %v439_v41 = vpop.f32.mrb[1].mxu0  ;;  %144 = sbr.rel (!%p142_p2) target bundleno = 261 (0x105), region = 65 }
 0x1ff   : > { %v243_v42 = vmul.f32 0.01, %v240_v40 }
 0x201   : > { %v244_v43 = vmax.f32 %v240_v40, %v243_v42  }
 0x203   : > { %v765_v11 = vmov %v244_v43  ;;  %473 = vmatmul.mubr.f32.vlgmr.msra.gmra.mrb[0].mxu0 (%p142_p2), %v244_v43 }
 0x2d6   :  { %v334_v6 = vpop.f32.mrb[0].mxu0 }
 0x2d7   :  { %v335_v7 = vadd.f32 %v360_v5, %v334_v6  ;;  %v474_v8 = vpop.f32.mrb[1].mxu0 }
 0x2d9   :  { %338 = vst [vmem:[%s764_s7] sm:$0xff] %v335_v7 }
 0x2da   :  { %343 = vsyncpa [#allocation3], 1 }
 0x2db   :  { %344 = vsyncpa [#allocation5], 1 }

</bundles_post_ra>
